<compile_context>
chip_gen: v7x
topology: tpu7x:2x2x1
jax: 0.10.0
libtpu: 0.0.40
codegen_flags: <defaults>
</compile_context>

<pallas_src>
import functools

import jax
import jax.numpy as jnp
from jax.experimental import pallas as pl
from jax.experimental.pallas import tpu as pltpu


# bf16 operands for the MXU (bf16-native on v5e/v6e/v7x); accumulation stays
# f32 via preferred_element_type. `embedded` is also stored bf16 in HBM.
MATMUL_DTYPE = jnp.bfloat16


# ---------------------------------------------------------------------------
# Fused kernel: im2col conv (all widths, one matmul) + bias + ReLU +
# masked max-over-time + MLP head.  One batch block (TB samples) per grid step.
# ---------------------------------------------------------------------------
def _fused_cnn_kernel(emb_ref, wc_ref, bc_ref, win_ref, w1_ref, b1_ref,
                      w2_ref, b2_ref, w3_ref, b3_ref, out_ref, *,
                      seq_len, matmul_dtype):
    S = seq_len
    rows, E = emb_ref.shape[1], emb_ref.shape[2]
    TB = rows // S
    Cpad = wc_ref.shape[1]
    max_fs = wc_ref.shape[0] // E

    emb = emb_ref[0]                                           # (TB*S, E) bf16

    # im2col: column block k holds emb shifted up by k rows.  Cross-sample /
    # tail garbage only lands in time positions masked out before pooling.
    # (Static slice + concat; pltpu.roll would also work but slice lowering is
    #  guaranteed for packed bf16 sublanes.)
    cols = [emb]
    for k in range(1, max_fs):
        cols.append(jnp.concatenate(
            [emb[k:, :], jnp.zeros((k, E), emb.dtype)], axis=0))
    x = jnp.concatenate(cols, axis=-1)                         # (TB*S, max_fs*E)

    # All filter widths in ONE lane-dense MXU matmul (K = max_fs*E).
    conv = jnp.dot(x, wc_ref[...], preferred_element_type=jnp.float32)
    conv = jnp.maximum(conv + bc_ref[...], 0.0)                # bias + ReLU
    conv = conv.reshape(TB, S, Cpad)

    # Masked max-over-time: lane j's valid window length is win_ref[0, j]
    # (0 for padding lanes); post-ReLU values are >= 0 so masking with 0 is
    # exact.  Result is the lane-dense "concat" of all pooled filters.
    pos = jax.lax.broadcasted_iota(jnp.int32, (S, Cpad), 0)
    valid = pos < win_ref[...]                                 # (S, Cpad)
    pooled = jnp.max(jnp.where(valid[None], conv, 0.0), axis=1)   # (TB, Cpad)
    # NOTE: reference's post-concat ReLU is a no-op on max-of-ReLU values.

    def dense(v, w_r, b_r):
        return jnp.dot(v.astype(matmul_dtype), w_r[...],
                       preferred_element_type=jnp.float32) + b_r[...]

    h1 = jnp.maximum(dense(pooled, w1_ref, b1_ref), 0.0)
    h2 = jnp.maximum(dense(h1, w2_ref, b2_ref), 0.0)
    out_ref[0] = dense(h2, w3_ref, b3_ref)                     # (TB, Opad)


# ---------------------------------------------------------------------------
# Wrapper helpers
# ---------------------------------------------------------------------------
def _round_up(x, m):
    return (x + m - 1) // m * m


def _vmem_limit_bytes():
    # Gen-aware scoped-VMEM limit: ~3/4 of physical (96 MiB on v5e/v6e's
    # 128 MiB, 48 MiB on v7x's 64 MiB), never below the 32 MiB default.
    try:
        cap = pltpu.get_tpu_info().vmem_capacity_bytes
    except Exception:
        cap = 64 << 20
    return int(max(32 << 20, min(cap * 3 // 4, 96 << 20)))


def _choose_batch_block(N, S, E, max_fs, cpad, vmem_limit):
    """Pick TB (samples per grid step, multiple of 8) and grid size G."""
    # Rough per-row (row == one token position) VMEM bytes inside a block:
    # double-buffered bf16 emb block + bf16 im2col operand + f32 conv tiles.
    bytes_per_row = 2 * (E * 2) + max_fs * E * 2 + 2 * cpad * 4
    budget = min(24 << 20, vmem_limit // 2)
    cap_rows = max(8 * S, budget // bytes_per_row)
    tb_cap = max(8, (cap_rows // S) // 8 * 8)

    n8 = _round_up(max(N, 1), 8)
    if n8 <= tb_cap:
        tb = n8
        # Split into >=2 grid blocks (v7x megacore) only when each block still
        # feeds the MXU with >=256 rows; single-TC v5e/v6e lose nothing.
        if tb >= 16 and (tb // 2) * S >= 256:
            tb = _round_up(-(-tb // 2), 8)
    else:
        tb = tb_cap
    g = -(-N // tb)
    return tb, g


# ---------------------------------------------------------------------------
# Forward pass
# ---------------------------------------------------------------------------
def cnn_forward(text, params):
    """Embedding gather (XLA) + one fused Pallas kernel for everything else."""
    emb_table = params["embedding"]
    filter_sizes = tuple(params["filter_sizes"])
    convs = params["convs"]
    w1, b1, w2, b2, w3, b3 = params["fc"]

    N, S = text.shape
    E = emb_table.shape[1]
    F = convs[0][0].shape[2]
    O = w3.shape[1]
    max_fs = max(filter_sizes)
    assert S >= max_fs, "seq_len must be >= max(filter_sizes)"

    C = len(filter_sizes) * F
    Cpad = _round_up(C, 128)
    Opad = _round_up(O, 128)

    # Embedding gather in XLA; store activations bf16 (halves the kernel's
    # dominant HBM read).
    embedded = jnp.take(emb_table, text, axis=0).astype(MATMUL_DTYPE)  # (N,S,E)

    # --- pack conv weights across taps AND filter sizes into one lane-dense
    #     (max_fs*E, Cpad) MXU operand; taps beyond a filter's width are zero.
    wc = jnp.zeros((max_fs * E, Cpad), jnp.float32)
    bc = jnp.zeros((1, Cpad), jnp.float32)
    win = jnp.zeros((1, Cpad), jnp.int32)          # valid pool length per lane
    for i, (fs, (w, b)) in enumerate(zip(filter_sizes, convs)):
        wc = wc.at[: fs * E, i * F:(i + 1) * F].set(w.reshape(fs * E, F))
        bc = bc.at[:, i * F:(i + 1) * F].set(b)
        win = win.at[:, i * F:(i + 1) * F].set(S - fs + 1)
    wc = wc.astype(MATMUL_DTYPE)

    # MLP weights: w1 consumes the lane-dense pooled tile directly (zero rows
    # for padding lanes); logits padded to a full 128-lane store.
    w1p = jnp.pad(w1, ((0, Cpad - C), (0, 0))).astype(MATMUL_DTYPE)
    w2c = w2.astype(MATMUL_DTYPE)
    w3p = jnp.pad(w3, ((0, 0), (0, Opad - O))).astype(MATMUL_DTYPE)
    b3p = jnp.pad(b3, ((0, 0), (0, Opad - O)))

    vmem_limit = _vmem_limit_bytes()
    TB, G = _choose_batch_block(N, S, E, max_fs, Cpad, vmem_limit)
    Np = G * TB
    if Np != N:
        embedded = jnp.pad(embedded, ((0, Np - N), (0, 0), (0, 0)))
    # Collapse (TB, S) -> rows here: free metadata reshape on the HBM array,
    # keeps the per-step block DMA contiguous (no in-kernel relayout).
    embedded = embedded.reshape(G, TB * S, E)

    def full_spec(shape):
        nd = len(shape)
        return pl.BlockSpec(shape, lambda i, _nd=nd: (0,) * _nd)

    weight_args = (wc, bc, win, w1p, b1, w2c, b2, w3p, b3p)
    in_specs = ([pl.BlockSpec((1, TB * S, E), lambda i: (i, 0, 0))]
                + [full_spec(a.shape) for a in weight_args])

    kernel = functools.partial(_fused_cnn_kernel,
                               seq_len=S, matmul_dtype=MATMUL_DTYPE)
    out = pl.pallas_call(
        kernel,
        out_shape=jax.ShapeDtypeStruct((G, TB, Opad), jnp.float32),
        grid=(G,),
        in_specs=in_specs,
        out_specs=pl.BlockSpec((1, TB, Opad), lambda i: (i, 0, 0)),
        compiler_params=pltpu.CompilerParams(
            dimension_semantics=("parallel",),
            vmem_limit_bytes=vmem_limit),
    )(embedded, *weight_args)

    return out.reshape(Np, Opad)[:N, :O]


# ---------------------------------------------------------------------------
# Parameter init + pure-JAX reference (f32)
# ---------------------------------------------------------------------------
def init_params(key, *, vocab_size, embedding_dim, n_filters, filter_sizes,
                output_size, pad_idx):
    keys = jax.random.split(key, 2 + len(filter_sizes) + 3)
    emb = 0.1 * jax.random.normal(keys[0], (vocab_size, embedding_dim),
                                  jnp.float32)
    emb = emb.at[pad_idx].set(0.0)       # nn.Embedding(padding_idx=...)

    convs = []
    for i, fs in enumerate(filter_sizes):
        kw, kb = jax.random.split(keys[1 + i])
        w = 0.1 * jax.random.normal(kw, (fs, embedding_dim, n_filters),
                                    jnp.float32)
        b = 0.1 * jax.random.normal(kb, (1, n_filters), jnp.float32)
        convs.append((w, b))

    def linear(k, fin, fout):
        kw, kb = jax.random.split(k)
        scale = 1.0 / (fin ** 0.5)
        w = jax.random.uniform(kw, (fin, fout), jnp.float32, -scale, scale)
        b = jax.random.uniform(kb, (1, fout), jnp.float32, -scale, scale)
        return w, b

    cat = len(filter_sizes) * n_filters
    w1, b1 = linear(keys[-3], cat, 512)
    w2, b2 = linear(keys[-2], 512, 256)
    w3, b3 = linear(keys[-1], 256, output_size)

    return {
        "embedding": emb,
        "filter_sizes": tuple(filter_sizes),
        "convs": convs,
        "fc": (w1, b1, w2, b2, w3, b3),
    }


def cnn_forward_ref(text, params):
    """Pure-JAX f32 reference of the same forward pass (eval-mode dropout)."""
    embedded = jnp.take(params["embedding"], text, axis=0)
    pooled = []
    for fs, (w, b) in zip(params["filter_sizes"], params["convs"]):
        N, S, E = embedded.shape
        L = S - fs + 1
        conv = jnp.zeros((N, L, w.shape[2]), jnp.float32)
        for k in range(fs):
            conv = conv + jnp.einsum("nle,ef->nlf", embedded[:, k:k + L, :],
                                     w[k])
        conv = jnp.maximum(conv + b[None, :, :], 0.0)
        pooled.append(jnp.max(conv, axis=1))
    x = jnp.maximum(jnp.concatenate(pooled, axis=1), 0.0)
    w1, b1, w2, b2, w3, b3 = params["fc"]
    h1 = jnp.maximum(x @ w1 + b1, 0.0)
    h2 = jnp.maximum(h1 @ w2 + b2, 0.0)
    return h2 @ w3 + b3


if __name__ == "__main__":
    kwargs = dict(
        vocab_size=50,
        embedding_dim=32,
        n_filters=8,
        filter_sizes=(2, 3, 4),
        output_size=3,
        pad_idx=0,
    )
    batch, seq_len = 2, 16

    key = jax.random.PRNGKey(0)
    k_param, k_text = jax.random.split(key)
    params = init_params(k_param, **kwargs)
    text = jax.random.randint(k_text, (batch, seq_len), 0,
                              kwargs["vocab_size"], dtype=jnp.int32)

    out = jax.block_until_ready(cnn_forward(text, params))
    ref = jax.block_until_ready(cnn_forward_ref(text, params))

    assert out.shape == (batch, kwargs["output_size"])
    assert jnp.allclose(out, ref, atol=3e-2, rtol=3e-2), (
        float(jnp.max(jnp.abs(out - ref))))

    print("KERNEL_OK")
</pallas_src>

<mosaic_0001>
module attributes {stable_mosaic.version = 11 : i64} {
  func.func @_fused_cnn_kernel(%arg0: i32, %arg1: memref<1x128x32xbf16, #tpu.memory_space<vmem>>, %arg2: memref<128x128xbf16, #tpu.memory_space<vmem>>, %arg3: memref<1x128xf32, #tpu.memory_space<vmem>>, %arg4: memref<1x128xi32, #tpu.memory_space<vmem>>, %arg5: memref<128x512xbf16, #tpu.memory_space<vmem>>, %arg6: memref<1x512xf32, #tpu.memory_space<vmem>>, %arg7: memref<512x256xbf16, #tpu.memory_space<vmem>>, %arg8: memref<1x256xf32, #tpu.memory_space<vmem>>, %arg9: memref<256x128xbf16, #tpu.memory_space<vmem>>, %arg10: memref<1x128xf32, #tpu.memory_space<vmem>>, %arg11: memref<1x8x128xf32, #tpu.memory_space<vmem>>) attributes {dimension_semantics = [#tpu.dimension_semantics<parallel>], iteration_bounds = array<i64: 1>, scalar_prefetch = 0 : i64, scratch_operands = 0 : i64, tpu.core_type = #tpu.core_type<tc>, window_params = [{transform_indices = @transform_0, window_bounds = array<i64: 1, 128, 32>}, {pipeline_mode = #tpu.pipeline_mode<synchronous>, transform_indices = @transform_1, window_bounds = array<i64: 128, 128>}, {pipeline_mode = #tpu.pipeline_mode<synchronous>, transform_indices = @transform_2, window_bounds = array<i64: 1, 128>}, {pipeline_mode = #tpu.pipeline_mode<synchronous>, transform_indices = @transform_3, window_bounds = array<i64: 1, 128>}, {pipeline_mode = #tpu.pipeline_mode<synchronous>, transform_indices = @transform_4, window_bounds = array<i64: 128, 512>}, {pipeline_mode = #tpu.pipeline_mode<synchronous>, transform_indices = @transform_5, window_bounds = array<i64: 1, 512>}, {pipeline_mode = #tpu.pipeline_mode<synchronous>, transform_indices = @transform_6, window_bounds = array<i64: 512, 256>}, {pipeline_mode = #tpu.pipeline_mode<synchronous>, transform_indices = @transform_7, window_bounds = array<i64: 1, 256>}, {pipeline_mode = #tpu.pipeline_mode<synchronous>, transform_indices = @transform_8, window_bounds = array<i64: 256, 128>}, {pipeline_mode = #tpu.pipeline_mode<synchronous>, transform_indices = @transform_9, window_bounds = array<i64: 1, 128>}, {transform_indices = @transform_10, window_bounds = array<i64: 1, 8, 128>}]} {
    %c0 = arith.constant 0 : index
    %c0_0 = arith.constant 0 : index
    %c0_1 = arith.constant 0 : index
    %0 = vector.load %arg1[%c0, %c0_0, %c0_1] : memref<1x128x32xbf16, #tpu.memory_space<vmem>>, vector<1x128x32xbf16>
    %1 = vector.shape_cast %0 : vector<1x128x32xbf16> to vector<128x32xbf16>
    %2 = vector.extract_strided_slice %1 {offsets = [1, 0], sizes = [127, 32], strides = [1, 1]} : vector<128x32xbf16> to vector<127x32xbf16>
    %cst = arith.constant 0.000000e+00 : bf16
    %3 = vector.broadcast %cst : bf16 to vector<1x32xbf16>
    %4 = tpu.concatenate %2, %3 in 0 : vector<127x32xbf16>, vector<1x32xbf16> -> vector<128x32xbf16>
    %5 = vector.extract_strided_slice %1 {offsets = [2, 0], sizes = [126, 32], strides = [1, 1]} : vector<128x32xbf16> to vector<126x32xbf16>
    %cst_2 = arith.constant 0.000000e+00 : bf16
    %6 = vector.broadcast %cst_2 : bf16 to vector<2x32xbf16>
    %7 = tpu.concatenate %5, %6 in 0 : vector<126x32xbf16>, vector<2x32xbf16> -> vector<128x32xbf16>
    %8 = vector.extract_strided_slice %1 {offsets = [3, 0], sizes = [125, 32], strides = [1, 1]} : vector<128x32xbf16> to vector<125x32xbf16>
    %cst_3 = arith.constant 0.000000e+00 : bf16
    %9 = vector.broadcast %cst_3 : bf16 to vector<3x32xbf16>
    %10 = tpu.concatenate %8, %9 in 0 : vector<125x32xbf16>, vector<3x32xbf16> -> vector<128x32xbf16>
    %11 = tpu.concatenate %1, %4, %7, %10 in 1 : vector<128x32xbf16>, vector<128x32xbf16>, vector<128x32xbf16>, vector<128x32xbf16> -> vector<128x128xbf16>
    %c0_4 = arith.constant 0 : index
    %c0_5 = arith.constant 0 : index
    %12 = vector.load %arg2[%c0_4, %c0_5] : memref<128x128xbf16, #tpu.memory_space<vmem>>, vector<128x128xbf16>
    %cst_6 = arith.constant dense<0.000000e+00> : vector<128x128xf32>
    %13 = tpu.matmul %11, %12, %cst_6 {dimension_numbers = #tpu.dot_dimension_numbers<[1], [0], [0], [1], [0, 0, 1, 1], [], []>} : vector<128x128xbf16>, vector<128x128xbf16>, vector<128x128xf32> -> vector<128x128xf32>
    %c0_7 = arith.constant 0 : index
    %c0_8 = arith.constant 0 : index
    %14 = vector.load %arg3[%c0_7, %c0_8] : memref<1x128xf32, #tpu.memory_space<vmem>>, vector<1x128xf32>
    %15 = vector.broadcast %14 : vector<1x128xf32> to vector<128x128xf32>
    %16 = arith.addf %13, %15 : vector<128x128xf32>
    %cst_9 = arith.constant 0.000000e+00 : f32
    %17 = vector.broadcast %cst_9 : f32 to vector<128x128xf32>
    %18 = arith.maximumf %16, %17 : vector<128x128xf32>
    %19 = vector.shape_cast %18 : vector<128x128xf32> to vector<8x16x128xf32>
    %20 = tpu.iota {dimensions = array<i32: 0>} : vector<16x128xi32>
    %c0_10 = arith.constant 0 : index
    %c0_11 = arith.constant 0 : index
    %21 = vector.load %arg4[%c0_10, %c0_11] : memref<1x128xi32, #tpu.memory_space<vmem>>, vector<1x128xi32>
    %22 = vector.broadcast %21 : vector<1x128xi32> to vector<16x128xi32>
    %23 = arith.cmpi slt, %20, %22 : vector<16x128xi32>
    %24 = vector.shape_cast %23 : vector<16x128xi1> to vector<1x16x128xi1>
    %cst_12 = arith.constant 0.000000e+00 : f32
    %25 = vector.shape_cast %24 : vector<1x16x128xi1> to vector<1x16x128xi1>
    %26 = vector.broadcast %25 : vector<1x16x128xi1> to vector<8x16x128xi1>
    %27 = vector.broadcast %cst_12 : f32 to vector<8x16x128xf32>
    %28 = arith.select %26, %19, %27 : vector<8x16x128xi1>, vector<8x16x128xf32>
    %cst_13 = arith.constant dense<0xFF800000> : vector<8x128xf32>
    %29 = vector.multi_reduction <maximumf>, %28, %cst_13 [1] : vector<8x16x128xf32> to vector<8x128xf32>
    %30 = arith.truncf %29 : vector<8x128xf32> to vector<8x128xbf16>
    %c0_14 = arith.constant 0 : index
    %c0_15 = arith.constant 0 : index
    %31 = vector.load %arg5[%c0_14, %c0_15] : memref<128x512xbf16, #tpu.memory_space<vmem>>, vector<128x512xbf16>
    %cst_16 = arith.constant dense<0.000000e+00> : vector<8x512xf32>
    %32 = tpu.matmul %30, %31, %cst_16 {dimension_numbers = #tpu.dot_dimension_numbers<[1], [0], [0], [1], [0, 0, 1, 1], [], []>} : vector<8x128xbf16>, vector<128x512xbf16>, vector<8x512xf32> -> vector<8x512xf32>
    %c0_17 = arith.constant 0 : index
    %c0_18 = arith.constant 0 : index
    %33 = vector.load %arg6[%c0_17, %c0_18] : memref<1x512xf32, #tpu.memory_space<vmem>>, vector<1x512xf32>
    %34 = vector.broadcast %33 : vector<1x512xf32> to vector<8x512xf32>
    %35 = arith.addf %32, %34 : vector<8x512xf32>
    %cst_19 = arith.constant 0.000000e+00 : f32
    %36 = vector.broadcast %cst_19 : f32 to vector<8x512xf32>
    %37 = arith.maximumf %35, %36 : vector<8x512xf32>
    %38 = arith.truncf %37 : vector<8x512xf32> to vector<8x512xbf16>
    %c0_20 = arith.constant 0 : index
    %c0_21 = arith.constant 0 : index
    %39 = vector.load %arg7[%c0_20, %c0_21] : memref<512x256xbf16, #tpu.memory_space<vmem>>, vector<512x256xbf16>
    %cst_22 = arith.constant dense<0.000000e+00> : vector<8x256xf32>
    %40 = tpu.matmul %38, %39, %cst_22 {dimension_numbers = #tpu.dot_dimension_numbers<[1], [0], [0], [1], [0, 0, 1, 1], [], []>} : vector<8x512xbf16>, vector<512x256xbf16>, vector<8x256xf32> -> vector<8x256xf32>
    %c0_23 = arith.constant 0 : index
    %c0_24 = arith.constant 0 : index
    %41 = vector.load %arg8[%c0_23, %c0_24] : memref<1x256xf32, #tpu.memory_space<vmem>>, vector<1x256xf32>
    %42 = vector.broadcast %41 : vector<1x256xf32> to vector<8x256xf32>
    %43 = arith.addf %40, %42 : vector<8x256xf32>
    %cst_25 = arith.constant 0.000000e+00 : f32
    %44 = vector.broadcast %cst_25 : f32 to vector<8x256xf32>
    %45 = arith.maximumf %43, %44 : vector<8x256xf32>
    %46 = arith.truncf %45 : vector<8x256xf32> to vector<8x256xbf16>
    %c0_26 = arith.constant 0 : index
    %c0_27 = arith.constant 0 : index
    %47 = vector.load %arg9[%c0_26, %c0_27] : memref<256x128xbf16, #tpu.memory_space<vmem>>, vector<256x128xbf16>
    %cst_28 = arith.constant dense<0.000000e+00> : vector<8x128xf32>
    %48 = tpu.matmul %46, %47, %cst_28 {dimension_numbers = #tpu.dot_dimension_numbers<[1], [0], [0], [1], [0, 0, 1, 1], [], []>} : vector<8x256xbf16>, vector<256x128xbf16>, vector<8x128xf32> -> vector<8x128xf32>
    %c0_29 = arith.constant 0 : index
    %c0_30 = arith.constant 0 : index
    %49 = vector.load %arg10[%c0_29, %c0_30] : memref<1x128xf32, #tpu.memory_space<vmem>>, vector<1x128xf32>
    %50 = vector.broadcast %49 : vector<1x128xf32> to vector<8x128xf32>
    %51 = arith.addf %48, %50 : vector<8x128xf32>
    %c0_31 = arith.constant 0 : index
    %c0_32 = arith.constant 0 : index
    %c0_33 = arith.constant 0 : index
    %52 = vector.load %arg11[%c0_31, %c0_32, %c0_33] : memref<1x8x128xf32, #tpu.memory_space<vmem>>, vector<1x8x128xf32>
    %53 = vector.shape_cast %52 : vector<1x8x128xf32> to vector<8x128xf32>
    %54 = vector.shape_cast %51 : vector<8x128xf32> to vector<1x8x128xf32>
    tpu.vector_store %arg11[%c0_31, %c0_32, %c0_33], %54 {strides = array<i32>} : memref<1x8x128xf32, #tpu.memory_space<vmem>>, vector<1x8x128xf32>,
    return
  }
  func.func @transform_0(%arg0: i32) -> (i32, i32, i32) {
    %c0_i32 = arith.constant 0 : i32
    %c0_i32_0 = arith.constant 0 : i32
    %c0_i32_1 = arith.constant 0 : i32
    return %arg0, %c0_i32, %c0_i32_0 : i32, i32, i32
  }
  func.func @transform_1(%arg0: i32) -> (i32, i32) {
    %c0_i32 = arith.constant 0 : i32
    %c0_i32_0 = arith.constant 0 : i32
    %c0_i32_1 = arith.constant 0 : i32
    return %c0_i32, %c0_i32_0 : i32, i32
  }
  func.func @transform_2(%arg0: i32) -> (i32, i32) {
    %c0_i32 = arith.constant 0 : i32
    %c0_i32_0 = arith.constant 0 : i32
    %c0_i32_1 = arith.constant 0 : i32
    return %c0_i32, %c0_i32_0 : i32, i32
  }
  func.func @transform_3(%arg0: i32) -> (i32, i32) {
    %c0_i32 = arith.constant 0 : i32
    %c0_i32_0 = arith.constant 0 : i32
    %c0_i32_1 = arith.constant 0 : i32
    return %c0_i32, %c0_i32_0 : i32, i32
  }
  func.func @transform_4(%arg0: i32) -> (i32, i32) {
    %c0_i32 = arith.constant 0 : i32
    %c0_i32_0 = arith.constant 0 : i32
    %c0_i32_1 = arith.constant 0 : i32
    return %c0_i32, %c0_i32_0 : i32, i32
  }
  func.func @transform_5(%arg0: i32) -> (i32, i32) {
    %c0_i32 = arith.constant 0 : i32
    %c0_i32_0 = arith.constant 0 : i32
    %c0_i32_1 = arith.constant 0 : i32
    return %c0_i32, %c0_i32_0 : i32, i32
  }
  func.func @transform_6(%arg0: i32) -> (i32, i32) {
    %c0_i32 = arith.constant 0 : i32
    %c0_i32_0 = arith.constant 0 : i32
    %c0_i32_1 = arith.constant 0 : i32
    return %c0_i32, %c0_i32_0 : i32, i32
  }
  func.func @transform_7(%arg0: i32) -> (i32, i32) {
    %c0_i32 = arith.constant 0 : i32
    %c0_i32_0 = arith.constant 0 : i32
    %c0_i32_1 = arith.constant 0 : i32
    return %c0_i32, %c0_i32_0 : i32, i32
  }
  func.func @transform_8(%arg0: i32) -> (i32, i32) {
    %c0_i32 = arith.constant 0 : i32
    %c0_i32_0 = arith.constant 0 : i32
    %c0_i32_1 = arith.constant 0 : i32
    return %c0_i32, %c0_i32_0 : i32, i32
  }
  func.func @transform_9(%arg0: i32) -> (i32, i32) {
    %c0_i32 = arith.constant 0 : i32
    %c0_i32_0 = arith.constant 0 : i32
    %c0_i32_1 = arith.constant 0 : i32
    return %c0_i32, %c0_i32_0 : i32, i32
  }
  func.func @transform_10(%arg0: i32) -> (i32, i32, i32) {
    %c0_i32 = arith.constant 0 : i32
    %c0_i32_0 = arith.constant 0 : i32
    %c0_i32_1 = arith.constant 0 : i32
    return %arg0, %c0_i32, %c0_i32_0 : i32, i32, i32
  }
}

</mosaic_0001>

<bundles_post_ra>
// kernel: tpu_custom_call.1
= control target key start
LH: loop header
LB: loop body
LE: loop exit
PB: predicated region body
PF: predicated region fallthrough
CT: control target
= control target key end

     0   :  { %15 = vsyncpa [#allocation3], 0  ;;  %s2546_s0 = inlined_call_operand.vmem [shape: bf16[1,128,32], index: 0, kind: input, shape index: {}]   ;;  %s2547_s1 = inlined_call_operand.vmem [shape: bf16[128,128], index: 1, kind: input, shape index: {}]   ;;  %s2548_s2 = inlined_call_operand.vmem [shape: f32[1,128], index: 2, kind: input, shape index: {}]   ;;  %s2549_s3 = inlined_call_operand.vmem [shape: s32[1,128], index: 3, kind: input, shape index: {}]   ;;  %s2550_s4 = inlined_call_operand.hbm [shape: bf16[128,512], index: 4, kind: input, shape index: {}]   ;;  %s2551_s5 = inlined_call_operand.vmem [shape: f32[1,512], index: 5, kind: input, shape index: {}]   ;;  %s2552_s6 = inlined_call_operand.hbm [shape: bf16[512,256], index: 6, kind: input, shape index: {}]   ;;  %s2553_s7 = inlined_call_operand.vmem [shape: f32[1,256], index: 7, kind: input, shape index: {}]   ;;  %s2554_s8 = inlined_call_operand.hbm [shape: bf16[256,128], index: 8, kind: input, shape index: {}]   ;;  %s2555_s9 = inlined_call_operand.vmem [shape: f32[1,128], index: 9, kind: input, shape index: {}]   ;;  %s2556_s10 = inlined_call_operand.hbm [shape: f32[1,8,128], index: 10, kind: output, shape index: {}]  }
   0x1   :  { %16 = vsyncpa [#allocation6], 0 }
   0x2   :  { %17 = vsyncpa [#allocation4], 0  ;;  %s2145_s13 = smov [#allocation5]   ;;  %s2051_s17 = scalar_lea.hbm %s2552_s6, 8192 }
   0x3   :  { %s45_s14 = sshll.u32 %s2145_s13, 4  ;;  %p2052_p0 = scmp.ne.s32.totalorder %s2552_s6, %s2051_s17  ;;  %s46_s14 = int_to_ptr.vmem [resolvable:$true] %s45_s14 }
   0x4   :  { %p2055_p1 = scmp.lt.u32.totalorder %s2051_s17, %s2552_s6 }
   0x6   :  { %p2057_p2 = pnand %p2055_p1, %p2052_p0 }
   0x8   :  { %2060 = shalt.err (!%p2057_p2)
}
   0x9   :  { %s2061_s22 = scalar_lea.vmem %s46_s14, 8192  ;;  %p2066_p4 = scmp.lt.s32.totalorder %s46_s14, %s46_s14 }
   0xa   :  { %p2062_p3 = scmp.ne.s32.totalorder %s46_s14, %s2061_s22  ;;  %p2067_p5 = scmp.lt.s32.totalorder %s2061_s22, %s2061_s22 }
   0xc   :  { %p2068_p6 = por %p2067_p5, %p2066_p4 }
   0xe   :  { %p2069_p7 = pnand %p2068_p6, %p2062_p3 }
  0x10   :  { %2072 = shalt.err (!%p2069_p7)
}
  0x11   :  { %s2146_s23 = smov 128   ;;  %s2147_s24 = smov 8  }
  0x12   :  { %51 = dma.hbm_to_vmem [thread:$0]  %s2552_s6, 8192, %s46_s14, [#allocation6], %s2146_s23, %s2146_s23, %s2147_s24  }
  0x13   :  { %s2148_s27 = smov [#allocation2]   ;;  %s2073_s11 = scalar_lea.hbm %s2550_s4, 4096 }
  0x14   :  { %s31_s28 = sshll.u32 %s2148_s27, 4  ;;  %p2074_p8 = scmp.ne.s32.totalorder %s2550_s4, %s2073_s11  ;;  %s32_s28 = int_to_ptr.vmem [resolvable:$true] %s31_s28 }
  0x15   :  { %p2077_p9 = scmp.lt.u32.totalorder %s2073_s11, %s2550_s4 }
  0x17   :  { %p2079_p10 = pnand %p2077_p9, %p2074_p8 }
  0x19   :  { %2082 = shalt.err (!%p2079_p10)
}
  0x1a   :  { %s2083_s17 = scalar_lea.vmem %s32_s28, 4096  ;;  %p2088_p12 = scmp.lt.s32.totalorder %s32_s28, %s32_s28 }
  0x1b   :  { %p2084_p11 = scmp.ne.s32.totalorder %s32_s28, %s2083_s17  ;;  %p2089_p13 = scmp.lt.s32.totalorder %s2083_s17, %s2083_s17 }
  0x1d   :  { %p2090_p0 = por %p2089_p13, %p2088_p12 }
  0x1f   :  { %p2091_p1 = pnand %p2090_p0, %p2084_p11 }
  0x21   :  { %2094 = shalt.err (!%p2091_p1)
}
  0x22   :  { %s2149_s6 = smov 256   ;;  %s2150_s14 = smov 16  }
  0x23   :  { %37 = dma.hbm_to_vmem [thread:$0]  %s2550_s4, 4096, %s32_s28, [#allocation3], %s2149_s6, %s2149_s6, %s2150_s14  }
  0x24   :  { %s2151_s20 = smov [#allocation7]   ;;  %s2095_s24 = scalar_lea.hbm %s2554_s8, 2048 }
  0x25   :  { %s59_s21 = sshll.u32 %s2151_s20, 4  ;;  %p2096_p2 = scmp.ne.s32.totalorder %s2554_s8, %s2095_s24  ;;  %s60_s21 = int_to_ptr.vmem [resolvable:$true] %s59_s21 }
  0x26   :  { %p2099_p3 = scmp.lt.u32.totalorder %s2095_s24, %s2554_s8 }
  0x28   :  { %p2101_p4 = pnand %p2099_p3, %p2096_p2 }
  0x2a   :  { %2104 = shalt.err (!%p2101_p4)
}
  0x2b   :  { %s2105_s30 = scalar_lea.vmem %s60_s21, 2048  ;;  %p2110_p6 = scmp.lt.s32.totalorder %s60_s21, %s60_s21 }
  0x2c   :  { %p2106_p5 = scmp.ne.s32.totalorder %s60_s21, %s2105_s30  ;;  %p2111_p7 = scmp.lt.s32.totalorder %s2105_s30, %s2105_s30 }
  0x2e   :  { %p2112_p8 = por %p2111_p7, %p2110_p6 }
  0x30   :  { %p2113_p9 = pnand %p2112_p8, %p2106_p5 }
  0x32   :  { %2116 = shalt.err (!%p2113_p9)
}
  0x33   :  { %s2152_s4 = smov 64   ;;  %s2153_s28 = smov 4  }
  0x34   :  { %65 = dma.hbm_to_vmem [thread:$0]  %s2554_s8, 2048, %s60_s21, [#allocation6], %s2152_s4, %s2152_s4, %s2153_s28  }
  0x35   :  { %2139 = dma.done.wait [#allocation3], 4096  }
  0x36   :  { %2140 = vsyncadd [#allocation3], 4294963200 }
  0x37   :  { %2141 = dma.done.wait [#allocation6], 10240  }
  0x38   :  { %2142 = vsyncadd [#allocation6], 4294957056  ;;  %v2254_v0 = vld [vmem:[%s2546_s0 + $0x10] sm:$0xff]   ;;  %v2259_v1 = vld [vmem:[%s2546_s0 + $0x18] sm:$0xff]   ;;  %vm202_vm0 = vcmask 1046528   ;;  %s2154_s25 = smov 32  }
  0x39   :  { %v206_v2 = vrot.slane %v2254_v0, 1  ;;  %v208_v3 = vrot.slane %v2259_v1, 1  ;;  %v2266_v4 = vld [vmem:[%s2546_s0] sm:$0xff]   ;;  %v2271_v5 = vld [vmem:[%s2546_s0 + $0x8] sm:$0xff]   ;;  %v151_v7 = vshll.u32 %v2254_v0, 16  ;;  %v155_v18 = vshrl.u32 %v2254_v0, 16 }
  0x3a   :  { %v2276_v6 = vld [vmem:[%s2546_s0 + $0x20] sm:$0xff]   ;;  %v203_v9 = vrot.slane %v2266_v4, 1  ;;  %v204_v10 = vrot.slane %v2271_v5, 1  ;;  %vm134_vm1 = vsmask.f32 7424  ;;  %v136_v11 = vshrl.u32 %v2266_v4, 16 }
  0x3b   :  { %v209_v8 = vsel %vm202_vm0, %v206_v2, %v208_v3  ;;  %v138_v12 = vshll.u32 %v2266_v4, 16  ;;  %v143_v13 = vshll.u32 %v2271_v5, 16  ;;  %v147_v14 = vshrl.u32 %v2271_v5, 16  ;;  %v1883_v31 = vld [vmem:[%s2547_s1] sm:$0xff]   ;;  %v1884_v36 = vld [vmem:[%s2547_s1 + $0x8] sm:$0xff]   ;;  %v1885_v44 = vld [vmem:[%s2547_s1 + $0x10] sm:$0xff]  }
  0x3c   :  { %279 = vrot.lane.b32.xlu0 %v209_v8, %s2152_s4  ;;  %vm222_vm2 = vsmask.f32 6400  ;;  %v205_v15 = vsel %vm202_vm0, %v203_v9, %v204_v10  ;;  %v207_v16 = vsel %vm202_vm0, %v204_v10, %v206_v2  ;;  %v210_v17 = vrot.slane %v2276_v6, 1  ;;  %1824 = vmatprep.subr.bf16.mxu0 %v1883_v31  ;;  %v2311_v41 = vld [vmem:[%s2546_s0 + $0x28] sm:$0xff]   ;;  %v2323_v52 = vld [vmem:[%s2546_s0 + $0x30] sm:$0xff]   ;;  %v1886_v56 = vld [vmem:[%s2547_s1 + $0x18] sm:$0xff]  }
  0x3d   :  { %275 = vrot.lane.b32.xlu1 %v205_v15, %s2152_s4  ;;  %v140_v19 = vrot.slane %v138_v12, 1  ;;  %v145_v20 = vrot.slane %v143_v13, 1  ;;  %v153_v21 = vrot.slane %v151_v7, 1  ;;  %v226_v22 = vrot.slane %v147_v14, 1  ;;  %1825 = vmatpush3.bf16.msra.mxu0 %v1883_v31  ;;  %s2155_s15 = smov 96   ;;  %v1887_v63 = vld [vmem:[%s2547_s1 + $0x20] sm:$0xff]   ;;  %vm2383_vm5 = vmand %vm202_vm0, %vm222_vm2 }
  0x3e   :  { %v227_v23 = vrot.slane %v143_v13, 2  ;;  %v230_v24 = vrot.slane %v155_v18, 1  ;;  %v231_v25 = vrot.slane %v151_v7, 2  ;;  %v223_v26 = vrot.slane %v136_v11, 1  ;;  %1826 = vmatprep.subr.bf16.mxu0 %v1884_v36  ;;  %v1890_v31 = vld [vmem:[%s2547_s1 + $0x38] sm:$0xff]   ;;  %s2157_s26 = smov [#allocation8]  }
  0x3f   :  { %v141_v27 = vor.u32 %v140_v19, %v136_v11  ;;  %v149_v28 = vor.u32 %v147_v14, %v145_v20  ;;  %v224_v29 = vrot.slane %v138_v12, 2  ;;  %v159_v30 = vshll.u32 %v2259_v1, 16  ;;  %v1888_v11 = vld [vmem:[%s2547_s1 + $0x28] sm:$0xff]   ;;  %s1645_s27 = sshll.u32 %s2157_s26, 4  ;;  %s1646_s27 = int_to_ptr.vmem [resolvable:$true] %s1645_s27 }
  0x40   :  { %v163_v32 = vshrl.u32 %v2259_v1, 16  ;;  %v167_v33 = vshll.u32 %v2276_v6, 16  ;;  %v211_v37 = vsel %vm202_vm0, %v208_v3, %v210_v17  ;;  %v228_v38 = vor.u32 %v227_v23, %v226_v22  ;;  %v2342_v3 = vld [vmem:[%s2546_s0 + $0x38] sm:$0xff]   ;;  %v1889_v23 = vld [vmem:[%s2547_s1 + $0x30] sm:$0xff]   ;;  %s2117_s29 = scalar_lea.vmem %s1646_s27, 128  ;;  %p2122_p11 = scmp.lt.s32.totalorder %s1646_s27, %s1646_s27 }
  0x41   :  { %277 = vrot.lane.b32.xlu1 %v207_v16, %s2152_s4  ;;  %v146_v34 = vsel %vm134_vm1, %v141_v27, %v145_v20  ;;  %v161_v35 = vrot.slane %v159_v30, 1  ;;  %v232_v39 = vor.u32 %v231_v25, %v230_v24  ;;  %v171_v40 = vshrl.u32 %v2276_v6, 16  ;;  %1827 = vmatpush3.bf16.msra.mxu0 %v1884_v36  ;;  %p2118_p10 = scmp.ne.s32.totalorder %s1646_s27, %s2117_s29  ;;  %p2123_p12 = scmp.lt.s32.totalorder %s2117_s29, %s2117_s29 }
  0x42   :  { %258 = vrot.lane.b32.xlu0 %v146_v34, %s2154_s25  ;;  %v154_v42 = vsel %vm134_vm1, %v149_v28, %v153_v21  ;;  %v225_v43 = vor.u32 %v224_v29, %v223_v26  ;;  %v169_v45 = vrot.slane %v167_v33, 1  ;;  %v234_v47 = vrot.slane %v163_v32, 1  ;;  %1828 = vmatprep.subr.bf16.mxu0 %v1885_v44 }
  0x43   :  { %v165_v46 = vor.u32 %v163_v32, %v161_v35  ;;  %v235_v48 = vrot.slane %v159_v30, 2  ;;  %v233_v49 = vsel %vm222_vm2, %v228_v38, %v232_v39  ;;  %v238_v50 = vrot.slane %v171_v40, 1  ;;  %p2124_p13 = por %p2123_p12, %p2122_p11 }
  0x44   :  { %v239_v51 = vrot.slane %v167_v33, 2  ;;  %v175_v53 = vshll.u32 %v2311_v41, 16  ;;  %v229_v54 = vsel %vm222_vm2, %v225_v43, %v228_v38  ;;  %v157_v55 = vor.u32 %v155_v18, %v153_v21 }
  0x45   :  { %281 = vrot.lane.b32.xlu1 %v211_v37, %s2152_s4  ;;  %v170_v57 = vsel %vm134_vm1, %v165_v46, %v169_v45  ;;  %v236_v58 = vor.u32 %v235_v48, %v234_v47  ;;  %v179_v61 = vshrl.u32 %v2311_v41, 16  ;;  %v183_v62 = vshll.u32 %v2323_v52, 16  ;;  %1829 = vmatpush3.bf16.msra.mxu0 %v1885_v44  ;;  %v1897_v37 = vld [vmem:[#allocation2 + $0x40] ss:$16 sps:$4 sm:$0xff]   ;;  %p2125_p0 = pnand %p2124_p13, %p2118_p10 }
  0x46   :  { %260 = vrot.lane.b32.xlu0 %v154_v42, %s2154_s25  ;;  %v240_v59 = vor.u32 %v239_v51, %v238_v50  ;;  %v177_v60 = vrot.slane %v175_v53, 1  ;;  %v162_v2 = vsel %vm134_vm1, %v157_v55, %v161_v35  ;;  %1830 = vmatprep.subr.bf16.mxu0 %v1886_v56  ;;  %v187_v10 = vshrl.u32 %v2323_v52, 16 }
  0x47   :  { %v185_v9 = vrot.slane %v183_v62, 1  ;;  %v237_v12 = vsel %vm222_vm2, %v232_v39, %v236_v58  ;;  %v173_v13 = vor.u32 %v171_v40, %v169_v45  ;;  %v212_v14 = vrot.slane %v2311_v41, 1 }
  0x48   :  { %v241_v7 = vsel %vm222_vm2, %v236_v58, %v240_v59  ;;  %v181_v8 = vor.u32 %v179_v61, %v177_v60  ;;  %vm199_vm3 = vcmask 1047552   ;;  %v214_v15 = vrot.slane %v2323_v52, 1 }
  0x49   :  { %294 = vrot.lane.b32.xlu1 %v233_v49, %s2155_s15  ;;  %1831 = vmatpush3.bf16.msra.mxu0 %v1886_v56  ;;  %v242_v16 = vrot.slane %v179_v61, 1  ;;  %v243_v18 = vrot.slane %v175_v53, 2  ;;  %v246_v20 = vrot.slane %v187_v10, 1  ;;  %v247_v21 = vrot.slane %v183_v62, 2  ;;  %vm2363_vm4 = vmand %vm199_vm3, %vm134_vm1 }
  0x4a   :  { %292 = vrot.lane.b32.xlu0 %v229_v54, %s2155_s15  ;;  %1832 = vmatprep.subr.bf16.mxu0 %v1887_v63  ;;  %v186_v19 = vsel %vm134_vm1, %v181_v8, %v185_v9  ;;  %v191_v22 = vshll.u32 %v2342_v3, 16  ;;  %v178_v24 = vsel %vm134_vm1, %v173_v13, %v177_v60  ;;  %v215_v26 = vsel %vm202_vm0, %v212_v14, %v214_v15 }
  0x4b   :  { %v244_v27 = vor.u32 %v243_v18, %v242_v16  ;;  %v248_v28 = vor.u32 %v247_v21, %v246_v20  ;;  %v195_v30 = vshrl.u32 %v2342_v3, 16  ;;  %v213_v32 = vsel %vm202_vm0, %v210_v17, %v212_v14 }
  0x4c   :  { %v193_v29 = vrot.slane %v191_v22, 1  ;;  %v189_v36 = vor.u32 %v187_v10, %v185_v9  ;;  %v216_v17 = vrot.slane %v2342_v3, 1  ;;  %v251_v40 = vrot.slane %v191_v22, 2 }
  0x4d   :  { %264 = vrot.lane.b32.xlu1 %v170_v57, %s2154_s25  ;;  %1833 = vmatpush3.bf16.msra.mxu0 %v1887_v63  ;;  %v249_v33 = vsel %vm222_vm2, %v244_v27, %v248_v28  ;;  %v245_v35 = vsel %vm222_vm2, %v240_v59, %v244_v27  ;;  %v250_v39 = vrot.slane %v195_v30, 1  ;;  %vm308_vm6 = vcmask 261120  }
  0x4e   :  { %262 = vrot.lane.b32.xlu0 %v162_v2, %s2154_s25  ;;  %1834 = vmatprep.subr.bf16.mxu0 %v1888_v11  ;;  %v197_v34 = vor.u32 %v195_v30, %v193_v29  ;;  %v194_v42 = vsel %vm134_vm1, %v189_v36, %v193_v29  ;;  %v221_v43 = vsel %vm202_vm0, %v216_v17, 0  ;;  %v217_v45 = vsel %vm202_vm0, %v214_v15, %v216_v17  ;;  %v1894_v36 = vld [vmem:[#allocation2 + $0x20] ss:$16 sps:$4 sm:$0xff]   ;;  %v1902_v17 = vld [vmem:[#allocation2 + $0x64] ss:$16 sps:$4 sm:$0xff]  }
  0x4f   :  { %v252_v44 = vor.u32 %v251_v40, %v250_v39  ;;  %vm325_vm7 = vcmask 523264   ;;  %vm342_vm8 = vcmask 785408   ;;  %v1905_v39 = vld [vmem:[#allocation2 + $0x84] ss:$16 sps:$4 sm:$0xff]   ;;  %v1903_v40 = vld [vmem:[#allocation2 + $0x80] ss:$16 sps:$4 sm:$0xff]  }
  0x50   :  { %v201_v38 = vsel %vm2363_vm4, %v197_v34, 0  ;;  %v1893_v34 = vld [vmem:[#allocation2 + $0x4] ss:$16 sps:$4 sm:$0xff]   ;;  %vm715_vm11 = vcmask 1041409   ;;  %vm717_vm12 = vcmask 1042434   ;;  %vm719_vm13 = vcmask 1043459  }
  0x51   :  { %298 = vrot.lane.b32.xlu1 %v241_v7, %s2155_s15  ;;  %1835 = vmatpush3.bf16.msra.mxu0 %v1888_v11  ;;  %v256_v46 = vsel %vm2383_vm5, %v252_v44, 0  ;;  %v253_v47 = vsel %vm222_vm2, %v248_v28, %v252_v44  ;;  %v1911_v44 = vld [vmem:[#allocation2 + $0xc4] ss:$16 sps:$4 sm:$0xff]   ;;  %vm721_vm14 = vcmask 1044484   ;;  %vm723_vm15 = vcmask 1045509  }
  0x52   :  { %296 = vrot.lane.b32.xlu0 %v237_v12, %s2155_s15  ;;  %1836 = vmatprep.subr.bf16.mxu0 %v1889_v23  ;;  %vm725_vm0 = vcmask 1046534   ;;  %vm727_vm1 = vcmask 1047559  }
  0x55   :  { %268 = vrot.lane.b32.xlu1 %v186_v19, %s2154_s25  ;;  %1837 = vmatpush3.bf16.msra.mxu0 %v1889_v23 }
  0x56   :  { %266 = vrot.lane.b32.xlu0 %v178_v24, %s2154_s25  ;;  %1838 = vmatprep.subr.bf16.mxu0 %v1890_v31 }
  0x59   :  { %285 = vrot.lane.b32.xlu1 %v215_v26, %s2152_s4  ;;  %1839 = vmatpush3.bf16.msra.mxu0 %v1890_v31 }
  0x5a   :  { %283 = vrot.lane.b32.xlu0 %v213_v32, %s2152_s4  ;;  %891 = vmatprep.subr.bf16.mxu0 %v1893_v34 }
  0x5d   :  { %302 = vrot.lane.b32.xlu1 %v249_v33, %s2155_s15 }
  0x5e   :  { %300 = vrot.lane.b32.xlu0 %v245_v35, %s2155_s15  ;;  %v1891_v35 = vld [vmem:[#allocation2] ss:$16 sps:$4 sm:$0xff]  }
  0x61   :  { %272 = vrot.lane.b32.xlu1 %v201_v38, %s2154_s25  ;;  %v1900_v38 = vld [vmem:[#allocation2 + $0x60] ss:$16 sps:$4 sm:$0xff]  }
  0x62   :  { %270 = vrot.lane.b32.xlu0 %v194_v42, %s2154_s25  ;;  %v1908_v42 = vld [vmem:[#allocation2 + $0xa4] ss:$16 sps:$4 sm:$0xff]  }
  0x65   :  { %289 = vrot.lane.b32.xlu1 %v221_v43, %s2152_s4  ;;  %v1906_v43 = vld [vmem:[#allocation2 + $0xa0] ss:$16 sps:$4 sm:$0xff]  }
  0x66   :  { %287 = vrot.lane.b32.xlu0 %v217_v45, %s2152_s4  ;;  %v1909_v45 = vld [vmem:[#allocation2 + $0xc0] ss:$16 sps:$4 sm:$0xff]  }
  0x69   :  { %306 = vrot.lane.b32.xlu1 %v256_v46, %s2155_s15  ;;  %v1914_v46 = vld [vmem:[#allocation2 + $0xe4] ss:$16 sps:$4 sm:$0xff]  }
  0x6a   :  { %304 = vrot.lane.b32.xlu0 %v253_v47, %s2155_s15  ;;  %v1912_v47 = vld [vmem:[#allocation2 + $0xe0] ss:$16 sps:$4 sm:$0xff]  }
  0xae   :  { %v280_v48 = vpop.permute.xlu0 %279 }
  0xaf   :  { %v276_v49 = vpop.permute.xlu1 %275 }
  0xb3   :  { %v278_v50 = vpop.permute.xlu1 %277 }
  0xb4   :  { %v259_v51 = vpop.permute.xlu0 %258 }
  0xb5   :  { %v310_v55 = vsel %vm308_vm6, %v2266_v4, %v259_v51  ;;  %v1941_v51 = vld [vmem:[#allocation5] ss:$8 sps:$4 sm:$0xff]  }
  0xb6   :  { %v327_v60 = vsel %vm325_vm7, %v310_v55, %v276_v49  ;;  %v1917_v49 = vld [vmem:[#allocation2 + $0xc] ss:$16 sps:$4 sm:$0xff]  }
  0xb7   :  { %v282_v53 = vpop.permute.xlu1 %281  ;;  %v1945_v55 = vld [vmem:[#allocation5 + $0x24] ss:$8 sps:$4 sm:$0xff]  }
  0xb8   :  { %v261_v54 = vpop.permute.xlu0 %260 }
  0xb9   :  { %v312_v56 = vsel %vm308_vm6, %v2271_v5, %v261_v54  ;;  %v1944_v54 = vld [vmem:[#allocation5 + $0x10] ss:$8 sps:$4 sm:$0xff]  }
  0xba   :  { %v329_v58 = vsel %vm325_vm7, %v312_v56, %v278_v50  ;;  %v1939_v50 = vld [vmem:[#allocation5 + $0x4] ss:$8 sps:$4 sm:$0xff]   ;;  %v1947_v56 = vld [vmem:[#allocation5 + $0x20] ss:$8 sps:$4 sm:$0xff]  }
  0xbb   :  { %v295_v57 = vpop.permute.xlu1 %294  ;;  %1377 = vmatprep.subr.bf16.mxu1 %v1939_v50 }
  0xbc   :  { %v293_v59 = vpop.permute.xlu0 %292  ;;  %v347_v61 = vsel %vm342_vm8, %v329_v58, %v295_v57  ;;  %1378 = vmatpush1.bf16.msra.mxu1 %v1941_v51  ;;  %v1948_v57 = vld [vmem:[#allocation5 + $0x34] ss:$8 sps:$4 sm:$0xff]   ;;  %v1950_v58 = vld [vmem:[#allocation5 + $0x30] ss:$8 sps:$4 sm:$0xff]  }
  0xbd   :  { %v344_v62 = vsel %vm342_vm8, %v327_v60, %v293_v59  ;;  %v1951_v59 = vld [vmem:[#allocation5 + $0x44] ss:$8 sps:$4 sm:$0xff]   ;;  %v1953_v60 = vld [vmem:[#allocation5 + $0x40] ss:$8 sps:$4 sm:$0xff]  }
  0xbe   :  { %1840 = vmatprep.mubr.bf16.mxu0 %v344_v62  ;;  %v1956_v62 = vld [vmem:[#allocation5 + $0x50] ss:$8 sps:$4 sm:$0xff]  }
  0xbf   :  { %1841 = vmatmul.mubr.bf16.vlgmr.msra.gmra.mrb[0].mxu0 %v347_v61  ;;  %v265_v63 = vpop.permute.xlu1 %264  ;;  %v1954_v61 = vld [vmem:[#allocation5 + $0x54] ss:$8 sps:$4 sm:$0xff]  }
  0xc0   :  { %v316_v4 = vsel %vm308_vm6, %v2259_v1, %v265_v63  ;;  %v263_v2 = vpop.permute.xlu0 %262  ;;  %892 = vmatpush1.bf16.msra.mxu0 %v1891_v35  ;;  %v1957_v63 = vld [vmem:[#allocation5 + $0x64] ss:$8 sps:$4 sm:$0xff]  }
  0xc1   :  { %v314_v5 = vsel %vm308_vm6, %v2254_v0, %v263_v2  ;;  %v333_v8 = vsel %vm325_vm7, %v316_v4, %v282_v53  ;;  %v1942_v53 = vld [vmem:[#allocation5 + $0x14] ss:$8 sps:$4 sm:$0xff]   ;;  %v1959_v4 = vld [vmem:[#allocation5 + $0x60] ss:$8 sps:$4 sm:$0xff]  }
  0xc2   :  { %v331_v10 = vsel %vm325_vm7, %v314_v5, %v280_v48  ;;  %v2156_v48 = vmov 0   ;;  %1379 = vmatprep.subr.bf16.mxu1 %v1942_v53  ;;  %v1960_v2 = vld [vmem:[#allocation5 + $0x74] ss:$8 sps:$4 sm:$0xff]   ;;  %v551_v5 = vlaneseq }
  0xc3   :  { %v299_v7 = vpop.permute.xlu1 %298  ;;  %1380 = vmatpush1.bf16.msra.mxu1 %v1944_v54 }
  0xc4   :  { %v297_v9 = vpop.permute.xlu0 %296  ;;  %v353_v11 = vsel %vm342_vm8, %v333_v8, %v299_v7  ;;  %1381 = vmatprep.subr.bf16.mxu1 %v1945_v55  ;;  %v1962_v7 = vld [vmem:[#allocation5 + $0x70] ss:$8 sps:$4 sm:$0xff]   ;;  %v1963_v8 = vld [vmem:[#allocation5 + $0x84] ss:$8 sps:$4 sm:$0xff]   ;;  %v1977_v55 = vld [vmem:[#allocation5 + $0xc0] ss:$8 sps:$4 sm:$0xff]  }
  0xc5   :  { %v350_v12 = vsel %vm342_vm8, %v331_v10, %v297_v9  ;;  %v2437_v9 = vshrl.u32 %v551_v5, 7  ;;  %v2442_v10 = vld [vmem:[%s2548_s2] ss:$0 sm:$0xff] }
  0xc6   :  { %1844 = vmatprep.mubr.bf16.mxu0 %v350_v12  ;;  %v1966_v12 = vld [vmem:[#allocation5 + $0x94] ss:$8 sps:$4 sm:$0xff]  }
  0xc7   :  { %1845 = vmatmul.mubr.bf16.gmra.mrb[4].mxu0 %v353_v11  ;;  %v269_v13 = vpop.permute.xlu1 %268  ;;  %1382 = vmatpush1.bf16.msra.mxu1 %v1947_v56  ;;  %v1965_v11 = vld [vmem:[#allocation5 + $0x80] ss:$8 sps:$4 sm:$0xff]  }
  0xc8   :  { %v267_v14 = vpop.permute.xlu0 %266  ;;  %v320_v16 = vsel %vm308_vm6, %v2311_v41, %v269_v13  ;;  %1383 = vmatprep.subr.bf16.mxu1 %v1948_v57 }
  0xc9   :  { %v318_v0 = vsel %vm308_vm6, %v2276_v6, %v267_v14  ;;  %v553_v14 = vadd.s32 8, %v2437_v9 }
  0xcb   :  { %v286_v15 = vpop.permute.xlu1 %285  ;;  %1384 = vmatpush1.bf16.msra.mxu1 %v1950_v58 }
  0xcc   :  { %v284_v1 = vpop.permute.xlu0 %283  ;;  %v337_v18 = vsel %vm325_vm7, %v320_v16, %v286_v15  ;;  %1385 = vmatprep.subr.bf16.mxu1 %v1951_v59  ;;  %v1978_v59 = vld [vmem:[#allocation5 + $0xd4] ss:$8 sps:$4 sm:$0xff]  }
  0xcd   :  { %v335_v20 = vsel %vm325_vm7, %v318_v0, %v284_v1  ;;  %v1672_v1 = vld [vmem:[%s2549_s3] ss:$0 sm:$0xff] }
  0xce   :  { %vm2452_vm9 = vcmp.lt.s32.totalorder %v2437_v9, %v1672_v1  ;;  %vm2456_vm10 = vcmp.lt.s32.totalorder %v553_v14, %v1672_v1 }
  0xcf   :  { %v303_v19 = vpop.permute.xlu1 %302  ;;  %1386 = vmatpush1.bf16.msra.mxu1 %v1953_v60 }
  0xd0   :  { %v301_v21 = vpop.permute.xlu0 %300  ;;  %v359_v22 = vsel %vm342_vm8, %v337_v18, %v303_v19  ;;  %1387 = vmatprep.subr.bf16.mxu1 %v1954_v61  ;;  %v1968_v19 = vld [vmem:[#allocation5 + $0x90] ss:$8 sps:$4 sm:$0xff]  }
  0xd1   :  { %v356_v23 = vsel %vm342_vm8, %v335_v20, %v301_v21 }
  0xd2   :  { %1848 = vmatprep.mubr.bf16.mxu0 %v356_v23  ;;  %v1969_v23 = vld [vmem:[#allocation5 + $0xa4] ss:$8 sps:$4 sm:$0xff]  }
  0xd3   :  { %1849 = vmatmul.mubr.bf16.gmra.mrb[8].mxu0 %v359_v22  ;;  %v273_v24 = vpop.permute.xlu1 %272  ;;  %1388 = vmatpush1.bf16.msra.mxu1 %v1956_v62 }
  0xd4   :  { %v271_v25 = vpop.permute.xlu0 %270  ;;  %v324_v41 = vsel %vm308_vm6, %v2342_v3, %v273_v24  ;;  %v1896_v3 = vld [vmem:[#allocation2 + $0x24] ss:$16 sps:$4 sm:$0xff]   ;;  %1389 = vmatprep.subr.bf16.mxu1 %v1957_v63 }
  0xd5   :  { %v322_v6 = vsel %vm308_vm6, %v2323_v52, %v271_v25  ;;  %893 = vmatprep.subr.bf16.mxu0 %v1896_v3  ;;  %v1899_v52 = vld [vmem:[#allocation2 + $0x44] ss:$16 sps:$4 sm:$0xff]  }
  0xd6   :  { %894 = vmatpush1.bf16.msra.mxu0 %v1894_v36 }
  0xd7   :  { %v290_v26 = vpop.permute.xlu1 %289  ;;  %895 = vmatprep.subr.bf16.mxu0 %v1899_v52  ;;  %1390 = vmatpush1.bf16.msra.mxu1 %v1959_v4 }
  0xd8   :  { %v288_v27 = vpop.permute.xlu0 %287  ;;  %v341_v28 = vsel %vm325_vm7, %v324_v41, %v290_v26  ;;  %1391 = vmatprep.subr.bf16.mxu1 %v1960_v2 }
  0xd9   :  { %v339_v30 = vsel %vm325_vm7, %v322_v6, %v288_v27 }
  0xda   :  { %896 = vmatpush1.bf16.msra.mxu0 %v1897_v37 }
  0xdb   :  { %v307_v29 = vpop.permute.xlu1 %306  ;;  %897 = vmatprep.subr.bf16.mxu0 %v1902_v17  ;;  %1392 = vmatpush1.bf16.msra.mxu1 %v1962_v7 }
  0xdc   :  { %v305_v31 = vpop.permute.xlu0 %304  ;;  %v365_v32 = vsel %vm342_vm8, %v341_v28, %v307_v29  ;;  %1393 = vmatprep.subr.bf16.mxu1 %v1963_v8  ;;  %v1971_v28 = vld [vmem:[#allocation5 + $0xa0] ss:$8 sps:$4 sm:$0xff]   ;;  %v1980_v8 = vld [vmem:[#allocation5 + $0xd0] ss:$8 sps:$4 sm:$0xff]  }
  0xdd   :  { %v362_v33 = vsel %vm342_vm8, %v339_v30, %v305_v31  ;;  %v1972_v31 = vld [vmem:[#allocation5 + $0xb4] ss:$8 sps:$4 sm:$0xff]  }
  0xde   :  { %1852 = vmatprep.mubr.bf16.mxu0 %v362_v33  ;;  %898 = vmatpush1.bf16.msra.mxu0 %v1900_v38 }
  0xdf   :  { %1853 = vmatmul.mubr.bf16.gmra.mrb[12].mxu0 %v365_v32  ;;  %899 = vmatprep.subr.bf16.mxu0 %v1905_v39  ;;  %v1974_v39 = vld [vmem:[#allocation5 + $0xb0] ss:$8 sps:$4 sm:$0xff]  }
  0xe0   :  { %923 = vmatprep.mubr.bf16.mxu0 %v2156_v48  ;;  %1394 = vmatpush1.bf16.msra.mxu1 %v1965_v11 }
  0xe1   :  { %1395 = vmatprep.subr.bf16.mxu1 %v1966_v12 }
  0xe2   :  { %900 = vmatpush1.bf16.msra.mxu0 %v1903_v40 }
  0xe3   :  { %901 = vmatprep.subr.bf16.mxu0 %v1908_v42 }
  0xe4   :  { %1396 = vmatpush1.bf16.msra.mxu1 %v1968_v19 }
  0xe5   :  { %1397 = vmatprep.subr.bf16.mxu1 %v1969_v23 }
  0xe6   :  { %902 = vmatpush1.bf16.msra.mxu0 %v1906_v43 }
  0xe7   :  { %903 = vmatprep.subr.bf16.mxu0 %v1911_v44 }
  0xe8   :  { %1398 = vmatpush1.bf16.msra.mxu1 %v1971_v28 }
  0xe9   :  { %1399 = vmatprep.subr.bf16.mxu1 %v1972_v31 }
  0xea   :  { %904 = vmatpush1.bf16.msra.mxu0 %v1909_v45  ;;  %v1975_v45 = vld [vmem:[#allocation5 + $0xc4] ss:$8 sps:$4 sm:$0xff]  }
  0xeb   :  { %905 = vmatprep.subr.bf16.mxu0 %v1914_v46 }
  0xec   :  { %1400 = vmatpush1.bf16.msra.mxu1 %v1974_v39 }
  0xed   :  { %1401 = vmatprep.subr.bf16.mxu1 %v1975_v45 }
  0xee   :  { %906 = vmatpush1.bf16.msra.mxu0 %v1912_v47 }
  0xef   :  { %932 = vmatprep.subr.bf16.mxu0 %v1917_v49 }
  0xf0   :  { %1402 = vmatpush1.bf16.msra.mxu1 %v1977_v55 }
  0xf1   :  { %1403 = vmatprep.subr.bf16.mxu1 %v1978_v59 }
  0xf4   :  { %1404 = vmatpush1.bf16.msra.mxu1 %v1980_v8 }
 0x192   :  { %v1842_v13 = vpop.f32.mrb[0].mxu0 }
 0x193   :  { %v481_v15 = vadd.f32 %v1842_v13, %v2442_v10  ;;  %v472_v16 = vpop.f32.mrb[1].mxu0 }
 0x194   :  { %v473_v0 = vadd.f32 %v2442_v10, %v472_v16  ;;  %v1843_v18 = vpop.f32.mrb[2].mxu0 }
 0x195   :  { %v537_v20 = vmax.f32 %v481_v15, 0.0  ;;  %v484_v21 = vadd.f32 %v1843_v18, %v2442_v10  ;;  %v475_v22 = vpop.f32.mrb[3].mxu0 }
 0x196   :  { %v535_v25 = vmax.f32 %v473_v0, 0.0  ;;  %v476_v27 = vadd.f32 %v2442_v10, %v475_v22 }
 0x197   :  { %v538_v41 = vmax.f32 %v484_v21, 0.0  ;;  %v567_v29 = vsel %vm2452_vm9, %v537_v20, 0.0 }
 0x198   :  { %v536_v6 = vmax.f32 %v476_v27, 0.0  ;;  %v565_v32 = vsel %vm2452_vm9, %v535_v25, 0.0 }
 0x199   :  { %v568_v30 = vsel %vm2456_vm10, %v538_v41, 0.0 }
 0x19a   :  { %v588_v33 = vmax.f32 %v567_v29, %v568_v30  ;;  %v566_v34 = vsel %vm2456_vm10, %v536_v6, 0.0  ;;  %v1846_v35 = vpop.f32.mrb[4].mxu0 }
 0x19b   :  { %v581_v3 = vmax.f32 %v565_v32, %v566_v34  ;;  %v497_v36 = vadd.f32 %v1846_v35, %v2442_v10  ;;  %v488_v52 = vpop.f32.mrb[5].mxu0 }
 0x19c   :  { %v589_v37 = vrot.slane %v588_v33, 4  ;;  %v489_v17 = vadd.f32 %v2442_v10, %v488_v52  ;;  %v1847_v38 = vpop.f32.mrb[6].mxu0 }
 0x19d   :  { %v582_v40 = vrot.slane %v581_v3, 4  ;;  %v541_v42 = vmax.f32 %v497_v36, 0.0  ;;  %v500_v43 = vadd.f32 %v1847_v38, %v2442_v10  ;;  %v491_v44 = vpop.f32.mrb[7].mxu0 }
 0x19e   :  { %v590_v46 = vmax.f32 %v588_v33, %v589_v37  ;;  %v539_v47 = vmax.f32 %v489_v17, 0.0  ;;  %v492_v49 = vadd.f32 %v2442_v10, %v491_v44 }
 0x19f   :  { %v583_v50 = vmax.f32 %v581_v3, %v582_v40  ;;  %v542_v51 = vmax.f32 %v500_v43, 0.0  ;;  %v571_v57 = vsel %vm2452_vm9, %v541_v42, 0.0 }
 0x1a0   :  { %v591_v53 = vrot.slane %v590_v46, 2  ;;  %v540_v54 = vmax.f32 %v492_v49, 0.0  ;;  %v569_v61 = vsel %vm2452_vm9, %v539_v47, 0.0 }
 0x1a1   :  { %v584_v56 = vrot.slane %v583_v50, 2  ;;  %v572_v58 = vsel %vm2456_vm10, %v542_v51, 0.0 }
 0x1a2   :  { %v592_v60 = vmax.f32 %v590_v46, %v591_v53  ;;  %v602_v62 = vmax.f32 %v571_v57, %v572_v58  ;;  %v570_v63 = vsel %vm2456_vm10, %v540_v54, 0.0 }
 0x1a3   :  { %v585_v4 = vmax.f32 %v583_v50, %v584_v56  ;;  %v595_v2 = vmax.f32 %v569_v61, %v570_v63 }
 0x1a4   :  { %v593_v5 = vrot.slane %v592_v60, 1  ;;  %v603_v7 = vrot.slane %v602_v62, 4 }
 0x1a5   :  { %v586_v11 = vrot.slane %v585_v4, 1  ;;  %v596_v12 = vrot.slane %v595_v2, 4 }
 0x1a6   :  { %v594_v13 = vmax.f32 %v592_v60, %v593_v5  ;;  %v604_v14 = vmax.f32 %v602_v62, %v603_v7  ;;  %v1850_v15 = vpop.f32.mrb[8].mxu0 }
 0x1a7   :  { %v587_v1 = vmax.f32 %v585_v4, %v586_v11  ;;  %v597_v16 = vmax.f32 %v595_v2, %v596_v12  ;;  %v513_v0 = vadd.f32 %v1850_v15, %v2442_v10  ;;  %v504_v18 = vpop.f32.mrb[9].mxu0 }
 0x1a8   :  { %v638_v19 = vpack.c.bf16 %v594_v13, %v594_v13  ;;  %v605_v20 = vrot.slane %v604_v14, 2  ;;  %v505_v21 = vadd.f32 %v2442_v10, %v504_v18  ;;  %v1851_v22 = vpop.f32.mrb[10].mxu0 }
 0x1a9   :  { %v637_v23 = vpack.c.bf16 %v587_v1, %v587_v1  ;;  %v598_v25 = vrot.slane %v597_v16, 2  ;;  %v545_v27 = vmax.f32 %v513_v0, 0.0  ;;  %v516_v41 = vadd.f32 %v1851_v22, %v2442_v10  ;;  %v507_v6 = vpop.f32.mrb[11].mxu0 }
 0x1aa   :  { %v708_v28 = vunpack.c.l.b16 %v638_v19  ;;  %v606_v29 = vmax.f32 %v604_v14, %v605_v20  ;;  %v543_v30 = vmax.f32 %v505_v21, 0.0  ;;  %v508_v31 = vadd.f32 %v2442_v10, %v507_v6 }
 0x1ab   :  { %v707_v32 = vunpack.c.l.b16 %v637_v23  ;;  %v599_v33 = vmax.f32 %v597_v16, %v598_v25  ;;  %v546_v34 = vmax.f32 %v516_v41, 0.0  ;;  %v575_v37 = vsel %vm2452_vm9, %v545_v27, 0.0 }
 0x1ac   :  { %v607_v35 = vrot.slane %v606_v29, 1  ;;  %v544_v3 = vmax.f32 %v508_v31, 0.0  ;;  %v573_v39 = vsel %vm2452_vm9, %v543_v30, 0.0 }
 0x1ad   :  { %v716_v36 = vsel %vm715_vm11, %v708_v28, %v707_v32  ;;  %v600_v52 = vrot.slane %v599_v33, 1  ;;  %v576_v17 = vsel %vm2456_vm10, %v546_v34, 0.0 }
 0x1ae   :  { %v608_v38 = vmax.f32 %v606_v29, %v607_v35  ;;  %v616_v40 = vmax.f32 %v575_v37, %v576_v17  ;;  %v574_v42 = vsel %vm2456_vm10, %v544_v3, 0.0 }
 0x1af   :  { %v601_v43 = vmax.f32 %v599_v33, %v600_v52  ;;  %v609_v44 = vmax.f32 %v573_v39, %v574_v42  ;;  %v1915_v42 = vld [vmem:[#allocation2 + $0x8] ss:$16 sps:$4 sm:$0xff]  }
 0x1b0   :  { %v640_v45 = vpack.c.bf16 %v608_v38, %v608_v38  ;;  %v617_v46 = vrot.slane %v616_v40, 4 }
 0x1b1   :  { %v639_v47 = vpack.c.bf16 %v601_v43, %v601_v43  ;;  %v610_v49 = vrot.slane %v609_v44, 4 }
 0x1b2   :  { %v618_v50 = vmax.f32 %v616_v40, %v617_v46  ;;  %v1854_v51 = vpop.f32.mrb[12].mxu0  ;;  %v710_v57 = vunpack.c.l.b16 %v640_v45  ;;  %v1920_v45 = vld [vmem:[#allocation2 + $0x2c] ss:$16 sps:$4 sm:$0xff]   ;;  %v1918_v46 = vld [vmem:[#allocation2 + $0x28] ss:$16 sps:$4 sm:$0xff]  }
 0x1b3   :  { %v709_v53 = vunpack.c.l.b16 %v639_v47  ;;  %v611_v54 = vmax.f32 %v609_v44, %v610_v49  ;;  %v529_v55 = vadd.f32 %v1854_v51, %v2442_v10  ;;  %v520_v56 = vpop.f32.mrb[13].mxu0  ;;  %v1923_v47 = vld [vmem:[#allocation2 + $0x4c] ss:$16 sps:$4 sm:$0xff]   ;;  %v1921_v49 = vld [vmem:[#allocation2 + $0x48] ss:$16 sps:$4 sm:$0xff]  }
 0x1b4   :  { %v619_v58 = vrot.slane %v618_v50, 2  ;;  %v521_v59 = vadd.f32 %v2442_v10, %v520_v56  ;;  %v1855_v60 = vpop.f32.mrb[14].mxu0  ;;  %v1924_v51 = vld [vmem:[#allocation2 + $0x68] ss:$16 sps:$4 sm:$0xff]  }
 0x1b5   :  { %v718_v61 = vsel %vm717_vm12, %v709_v53, %v716_v36  ;;  %v612_v62 = vrot.slane %v611_v54, 2  ;;  %v549_v63 = vmax.f32 %v529_v55, 0.0  ;;  %v532_v4 = vadd.f32 %v1855_v60, %v2442_v10  ;;  %v523_v2 = vpop.f32.mrb[15].mxu0  ;;  %v1929_v53 = vld [vmem:[#allocation2 + $0x8c] ss:$16 sps:$4 sm:$0xff]  }
 0x1b6   :  { %v620_v5 = vmax.f32 %v618_v50, %v619_v58  ;;  %v720_v7 = vsel %vm719_vm13, %v710_v57, %v718_v61  ;;  %v547_v8 = vmax.f32 %v521_v59, 0.0  ;;  %v524_v11 = vadd.f32 %v2442_v10, %v523_v2  ;;  %v1926_v50 = vld [vmem:[#allocation2 + $0x6c] ss:$16 sps:$4 sm:$0xff]   ;;  %v1930_v56 = vld [vmem:[#allocation2 + $0xa8] ss:$16 sps:$4 sm:$0xff]   ;;  %v2035_v2 = vld [vmem:[#allocation7 + $0x40] sm:$0xff]  }
 0x1b7   :  { %v613_v12 = vmax.f32 %v611_v54, %v612_v62  ;;  %v550_v13 = vmax.f32 %v532_v4, 0.0  ;;  %v579_v16 = vsel %vm2452_vm9, %v549_v63, 0.0  ;;  %v1927_v54 = vld [vmem:[#allocation2 + $0x88] ss:$16 sps:$4 sm:$0xff]   ;;  %v1932_v55 = vld [vmem:[#allocation2 + $0xac] ss:$16 sps:$4 sm:$0xff]  }
 0x1b8   :  { %v621_v14 = vrot.slane %v620_v5, 1  ;;  %v548_v15 = vmax.f32 %v524_v11, 0.0  ;;  %v577_v19 = vsel %vm2452_vm9, %v547_v8, 0.0  ;;  %v1935_v57 = vld [vmem:[#allocation2 + $0xcc] ss:$16 sps:$4 sm:$0xff]   ;;  %v2039_v11 = vld [vmem:[#allocation7 + $0x50] sm:$0xff]  }
 0x1b9   :  { %v614_v1 = vrot.slane %v613_v12, 1  ;;  %v580_v0 = vsel %vm2456_vm10, %v550_v13, 0.0  ;;  %v1938_v58 = vld [vmem:[#allocation2 + $0xec] ss:$16 sps:$4 sm:$0xff]   ;;  %v1936_v59 = vld [vmem:[#allocation2 + $0xe8] ss:$16 sps:$4 sm:$0xff]  }
 0x1ba   :  { %v622_v18 = vmax.f32 %v620_v5, %v621_v14  ;;  %v630_v20 = vmax.f32 %v579_v16, %v580_v0  ;;  %v578_v21 = vsel %vm2456_vm10, %v548_v15, 0.0  ;;  %v1981_v60 = vld [vmem:[#allocation5 + $0xe4] ss:$8 sps:$4 sm:$0xff]   ;;  %v1983_v61 = vld [vmem:[#allocation5 + $0xe0] ss:$8 sps:$4 sm:$0xff]   ;;  %v2041_v13 = vld [vmem:[#allocation7 + $0x58] sm:$0xff]  }
 0x1bb   :  { %v615_v10 = vmax.f32 %v613_v12, %v614_v1  ;;  %v623_v22 = vmax.f32 %v577_v19, %v578_v21  ;;  %1405 = vmatprep.subr.bf16.mxu1 %v1981_v60  ;;  %v1984_v62 = vld [vmem:[#allocation5 + $0xf4] ss:$8 sps:$4 sm:$0xff]   ;;  %v1986_v63 = vld [vmem:[#allocation5 + $0xf0] ss:$8 sps:$4 sm:$0xff]   ;;  %v1989_v4 = vld [vmem:[#allocation5 + $0x104] ss:$8 sps:$4 sm:$0xff]  }
 0x1bc   :  { %v642_v23 = vpack.c.bf16 %v622_v18, %v622_v18  ;;  %v631_v25 = vrot.slane %v630_v20, 4  ;;  %1406 = vmatpush1.bf16.msra.mxu1 %v1983_v61  ;;  %v2036_v5 = vld [vmem:[#allocation7] sm:$0xff]   ;;  %v2038_v8 = vld [vmem:[#allocation7 + $0x8] sm:$0xff]   ;;  %v2040_v12 = vld [vmem:[#allocation7 + $0x10] sm:$0xff]   ;;  %v681_v18 = vsub.s32 0, %v2437_v9 }
 0x1bd   :  { %v641_v27 = vpack.c.bf16 %v615_v10, %v615_v10  ;;  %v624_v41 = vrot.slane %v623_v22, 4  ;;  %1407 = vmatprep.subr.bf16.mxu1 %v1984_v62  ;;  %v2042_v14 = vld [vmem:[#allocation7 + $0x18] sm:$0xff]   ;;  %v2043_v15 = vld [vmem:[#allocation7 + $0x60] sm:$0xff]   ;;  %v2045_v16 = vld [vmem:[#allocation7 + $0x68] sm:$0xff]  }
 0x1be   :  { %v632_v6 = vmax.f32 %v630_v20, %v631_v25  ;;  %v712_v30 = vunpack.c.l.b16 %v642_v23  ;;  %v2044_v1 = vld [vmem:[#allocation7 + $0x20] sm:$0xff]   ;;  %v2046_v0 = vld [vmem:[#allocation7 + $0x28] sm:$0xff]   ;;  %v685_v20 = vsub.s32 1, %v2437_v9  ;;  %v2020_v60 = vld [vmem:[#allocation5 + $0x1b0] ss:$8 sps:$4 sm:$0xff]  }
 0x1bf   :  { %v711_v28 = vunpack.c.l.b16 %v641_v27  ;;  %v625_v29 = vmax.f32 %v623_v22, %v624_v41  ;;  %v2511_v19 = vld [vmem:[%s2551_s5] sm:$0xf]  ;;  %v2025_v61 = vld [vmem:[#allocation5 + $0x1c4] ss:$8 sps:$4 sm:$0xff]  }
 0x1c0   :  { %v633_v31 = vrot.slane %v632_v6, 2  ;;  %1408 = vmatpush1.bf16.msra.mxu1 %v1986_v63  ;;  %v682_v21 = vrot.slane %v2511_v19, %v681_v18  ;;  %v686_v10 = vrot.slane %v2511_v19, %v685_v20  ;;  %v2023_v62 = vld [vmem:[#allocation5 + $0x1c0] ss:$8 sps:$4 sm:$0xff]   ;;  %v689_v63 = vsub.s32 2, %v2437_v9 }
 0x1c1   :  { %v722_v32 = vsel %vm721_vm14, %v711_v28, %v720_v7  ;;  %v626_v24 = vrot.slane %v625_v29, 2  ;;  %1418 = vmatprep.subr.bf16.mxu1 %v1989_v4  ;;  %v2037_v7 = vld [vmem:[#allocation7 + $0x48] sm:$0xff]   ;;  %v2028_v4 = vld [vmem:[#allocation5 + $0x1d4] ss:$8 sps:$4 sm:$0xff]  }
 0x1c2   :  { %v634_v33 = vmax.f32 %v632_v6, %v633_v31  ;;  %v724_v34 = vsel %vm723_vm15, %v712_v30, %v722_v32  ;;  %v1987_v31 = vld [vmem:[#allocation5 + $0x100] ss:$8 sps:$4 sm:$0xff]  }
 0x1c3   :  { %v627_v35 = vmax.f32 %v625_v29, %v626_v24  ;;  %v1992_v24 = vld [vmem:[#allocation5 + $0x114] ss:$8 sps:$4 sm:$0xff]  }
 0x1c4   :  { %v635_v26 = vrot.slane %v634_v33, 1 }
 0x1c5   :  { %v628_v3 = vrot.slane %v627_v35, 1 }
 0x1c6   :  { %v636_v36 = vmax.f32 %v634_v33, %v635_v26  ;;  %v1990_v33 = vld [vmem:[#allocation5 + $0x110] ss:$8 sps:$4 sm:$0xff]   ;;  %v1998_v26 = vld [vmem:[#allocation5 + $0x134] ss:$8 sps:$4 sm:$0xff]  }
 0x1c7   :  { %v629_v52 = vmax.f32 %v627_v35, %v628_v3  ;;  %v1993_v35 = vld [vmem:[#allocation5 + $0x120] ss:$8 sps:$4 sm:$0xff]   ;;  %v1996_v3 = vld [vmem:[#allocation5 + $0x130] ss:$8 sps:$4 sm:$0xff]  }
 0x1c8   :  { %v644_v37 = vpack.c.bf16 %v636_v36, %v636_v36  ;;  %v2001_v36 = vld [vmem:[#allocation5 + $0x144] ss:$8 sps:$4 sm:$0xff]  }
 0x1c9   :  { %v643_v17 = vpack.c.bf16 %v629_v52, %v629_v52  ;;  %v1999_v52 = vld [vmem:[#allocation5 + $0x140] ss:$8 sps:$4 sm:$0xff]  }
 0x1ca   :  { %v714_v39 = vunpack.c.l.b16 %v644_v37  ;;  %v2004_v37 = vld [vmem:[#allocation5 + $0x154] ss:$8 sps:$4 sm:$0xff]  }
 0x1cb   :  { %v713_v38 = vunpack.c.l.b16 %v643_v17  ;;  %v2002_v17 = vld [vmem:[#allocation5 + $0x150] ss:$8 sps:$4 sm:$0xff]  }
 0x1cd   :  { %v726_v40 = vsel %vm725_vm0, %v713_v38, %v724_v34  ;;  %v1995_v34 = vld [vmem:[#allocation5 + $0x124] ss:$8 sps:$4 sm:$0xff]   ;;  %v693_v38 = vsub.s32 3, %v2437_v9 }
 0x1ce   :  { %v728_v43 = vsel %vm727_vm1, %v714_v39, %v726_v40  ;;  %v2007_v39 = vld [vmem:[#allocation5 + $0x164] ss:$8 sps:$4 sm:$0xff]  }
 0x1cf   :  { %v729_v44 = vpack.c.b16 %v728_v43, %v728_v43  ;;  %v694_v40 = vrot.slane %v2511_v19, %v693_v38  ;;  %v2010_v43 = vld [vmem:[#allocation5 + $0x174] ss:$8 sps:$4 sm:$0xff]  }
 0x1d1   :  { %924 = vmatmul.mubr.bf16.vlgmr.msra.gmra.mrb[16].mxu0 %v729_v44 }
 0x1d2   :  { %933 = vmatpush1.bf16.msra.mxu0 %v1915_v42  ;;  %964 = vmatprep.mubr.bf16.mxu0 %v2156_v48  ;;  %v1933_v48 = vld [vmem:[#allocation2 + $0xc8] ss:$16 sps:$4 sm:$0xff]  }
 0x1d3   :  { %934 = vmatprep.subr.bf16.mxu0 %v1920_v45  ;;  %v2005_v42 = vld [vmem:[#allocation5 + $0x160] ss:$8 sps:$4 sm:$0xff]  }
 0x1d6   :  { %935 = vmatpush1.bf16.msra.mxu0 %v1918_v46 }
 0x1d7   :  { %936 = vmatprep.subr.bf16.mxu0 %v1923_v47 }
 0x1da   :  { %937 = vmatpush1.bf16.msra.mxu0 %v1921_v49  ;;  %v2008_v49 = vld [vmem:[#allocation5 + $0x170] ss:$8 sps:$4 sm:$0xff]  }
 0x1db   :  { %938 = vmatprep.subr.bf16.mxu0 %v1926_v50 }
 0x1de   :  { %939 = vmatpush1.bf16.msra.mxu0 %v1924_v51  ;;  %v2013_v51 = vld [vmem:[#allocation5 + $0x184] ss:$8 sps:$4 sm:$0xff]  }
 0x1df   :  { %940 = vmatprep.subr.bf16.mxu0 %v1929_v53 }
 0x1e2   :  { %941 = vmatpush1.bf16.msra.mxu0 %v1927_v54 }
 0x1e3   :  { %942 = vmatprep.subr.bf16.mxu0 %v1932_v55  ;;  %v2011_v55 = vld [vmem:[#allocation5 + $0x180] ss:$8 sps:$4 sm:$0xff]  }
 0x1e6   :  { %943 = vmatpush1.bf16.msra.mxu0 %v1930_v56  ;;  %v2016_v56 = vld [vmem:[#allocation5 + $0x194] ss:$8 sps:$4 sm:$0xff]  }
 0x1e7   :  { %944 = vmatprep.subr.bf16.mxu0 %v1935_v57  ;;  %v2014_v57 = vld [vmem:[#allocation5 + $0x190] ss:$8 sps:$4 sm:$0xff]  }
 0x1ea   :  { %945 = vmatpush1.bf16.msra.mxu0 %v1933_v48  ;;  %v2019_v48 = vld [vmem:[#allocation5 + $0x1a4] ss:$8 sps:$4 sm:$0xff]  }
 0x1eb   :  { %946 = vmatprep.subr.bf16.mxu0 %v1938_v58  ;;  %v2017_v58 = vld [vmem:[#allocation5 + $0x1a0] ss:$8 sps:$4 sm:$0xff]  }
 0x1ee   :  { %947 = vmatpush1.bf16.msra.mxu0 %v1936_v59  ;;  %v2022_v59 = vld [vmem:[#allocation5 + $0x1b4] ss:$8 sps:$4 sm:$0xff]  }
 0x1ef   :  { %1802 = vmatprep.subr.bf16.mxu0 %v2035_v2  ;;  %v2026_v2 = vld [vmem:[#allocation5 + $0x1d0] ss:$8 sps:$4 sm:$0xff]  }
 0x1f1   :  { %965 = vmatmul.mubr.bf16.vlgmr.msra.gmra.mrb[20].mxu0 %v729_v44 }
 0x1f2   :  { %1803 = vmatpush3.bf16.msra.mxu0 %v2036_v5  ;;  %v690_v5 = vrot.slane %v2511_v19, %v689_v63  ;;  %v2050_v19 = vld [vmem:[#allocation7 + $0x38] sm:$0xff]  }
 0x1f3   :  { %1804 = vmatprep.subr.bf16.mxu0 %v2037_v7  ;;  %v2031_v7 = vld [vmem:[#allocation5 + $0x1e4] ss:$8 sps:$4 sm:$0xff]  }
 0x1f6   :  { %1805 = vmatpush3.bf16.msra.mxu0 %v2038_v8  ;;  %v2029_v8 = vld [vmem:[#allocation5 + $0x1e0] ss:$8 sps:$4 sm:$0xff]  }
 0x1f7   :  { %1806 = vmatprep.subr.bf16.mxu0 %v2039_v11 }
 0x1fa   :  { %1807 = vmatpush3.bf16.msra.mxu0 %v2040_v12  ;;  %v2034_v12 = vld [vmem:[#allocation5 + $0x1f4] ss:$8 sps:$4 sm:$0xff]  }
 0x1fb   :  { %1808 = vmatprep.subr.bf16.mxu0 %v2041_v13  ;;  %v2032_v13 = vld [vmem:[#allocation5 + $0x1f0] ss:$8 sps:$4 sm:$0xff]  }
 0x1fe   :  { %1809 = vmatpush3.bf16.msra.mxu0 %v2042_v14 }
 0x1ff   :  { %1810 = vmatprep.subr.bf16.mxu0 %v2043_v15 }
 0x202   :  { %1811 = vmatpush3.bf16.msra.mxu0 %v2044_v1  ;;  %v2047_v1 = vld [vmem:[#allocation7 + $0x70] sm:$0xff]  }
 0x203   :  { %1812 = vmatprep.subr.bf16.mxu0 %v2045_v16  ;;  %v2048_v16 = vld [vmem:[#allocation7 + $0x30] sm:$0xff]  }
 0x206   :  { %1813 = vmatpush3.bf16.msra.mxu0 %v2046_v0  ;;  %v2049_v0 = vld [vmem:[#allocation7 + $0x78] sm:$0xff]  }
 0x207   :  { %1814 = vmatprep.subr.bf16.mxu0 %v2047_v1 }
 0x20a   :  { %1815 = vmatpush3.bf16.msra.mxu0 %v2048_v16 }
 0x20b   :  { %1816 = vmatprep.subr.bf16.mxu0 %v2049_v0 }
 0x20e   :  { %1817 = vmatpush3.bf16.msra.mxu0 %v2050_v19 }
 0x2a4   :  { %v925_v22 = vpop.f32.mrb[16].mxu0 }
 0x2a5   :  { %v926_v23 = vadd.f32 %v925_v22, %v682_v21  ;;  %v927_v25 = vpop.f32.mrb[17].mxu0  ;;  %v1045_v21 = vld [vmem:[%s2553_s7] sm:$0x3] }
 0x2a6   :  { %v928_v27 = vadd.f32 %v927_v25, %v686_v10  ;;  %v929_v41 = vpop.f32.mrb[18].mxu0  ;;  %v1050_v10 = vrot.slane %v1045_v21, %v681_v18  ;;  %v1054_v22 = vrot.slane %v1045_v21, %v685_v20  ;;  %v1769_v18 = vld [vmem:[%s2555_s9] ss:$0 sm:$0xff] }
 0x2a7   :  { %v973_v6 = vmax.f32 %v926_v23, 0.0  ;;  %v930_v28 = vpop.f32.mrb[19].mxu0 }
 0x2a8   :  { %v974_v29 = vmax.f32 %v928_v27, 0.0 }
 0x2a9   :  { %v977_v32 = vpack.c.bf16 %v973_v6, %v973_v6 }
 0x2aa   :  { %v978_v30 = vpack.c.bf16 %v974_v29, %v974_v29 }
 0x2ac   :  { %1409 = vmatprep.mubr.bf16.mxu1 %v978_v30 }
 0x2ad   :  { %1410 = vmatmul.mubr.bf16.vlgmr.msra.gmra.mrb[0].mxu1 %v977_v32 }
 0x2ae   :  { %1419 = vmatpush1.bf16.msra.mxu1 %v1987_v31 }
 0x2af   :  { %1420 = vmatprep.subr.bf16.mxu1 %v1992_v24 }
 0x2b2   :  { %1421 = vmatpush1.bf16.msra.mxu1 %v1990_v33 }
 0x2b3   :  { %1422 = vmatprep.subr.bf16.mxu1 %v1995_v34 }
 0x2b6   :  { %1423 = vmatpush1.bf16.msra.mxu1 %v1993_v35 }
 0x2b7   :  { %1424 = vmatprep.subr.bf16.mxu1 %v1998_v26 }
 0x2ba   :  { %1425 = vmatpush1.bf16.msra.mxu1 %v1996_v3 }
 0x2bb   :  { %1426 = vmatprep.subr.bf16.mxu1 %v2001_v36 }
 0x2be   :  { %1427 = vmatpush1.bf16.msra.mxu1 %v1999_v52 }
 0x2bf   :  { %1428 = vmatprep.subr.bf16.mxu1 %v2004_v37 }
 0x2c2   :  { %1429 = vmatpush1.bf16.msra.mxu1 %v2002_v17 }
 0x2c3   :  { %1430 = vmatprep.subr.bf16.mxu1 %v2007_v39 }
 0x2c4   :  { %v966_v44 = vpop.f32.mrb[20].mxu0 }
 0x2c5   :  { %v968_v45 = vpop.f32.mrb[21].mxu0  ;;  %v967_v11 = vadd.f32 %v966_v44, %v690_v5 }
 0x2c6   :  { %v969_v46 = vadd.f32 %v968_v45, %v694_v40  ;;  %v970_v47 = vpop.f32.mrb[22].mxu0  ;;  %1431 = vmatpush1.bf16.msra.mxu1 %v2005_v42 }
 0x2c7   :  { %v971_v50 = vpop.f32.mrb[23].mxu0  ;;  %1432 = vmatprep.subr.bf16.mxu1 %v2010_v43  ;;  %v975_v14 = vmax.f32 %v967_v11, 0.0 }
 0x2c8   :  { %v976_v53 = vmax.f32 %v969_v46, 0.0 }
 0x2c9   :  { %v979_v15 = vpack.c.bf16 %v975_v14, %v975_v14 }
 0x2ca   :  { %v980_v54 = vpack.c.bf16 %v976_v53, %v976_v53  ;;  %1433 = vmatpush1.bf16.msra.mxu1 %v2008_v49 }
 0x2cb   :  { %1434 = vmatprep.subr.bf16.mxu1 %v2013_v51 }
 0x2cc   :  { %1450 = vmatprep.mubr.bf16.mxu1 %v980_v54 }
 0x2ce   :  { %1435 = vmatpush1.bf16.msra.mxu1 %v2011_v55 }
 0x2cf   :  { %1436 = vmatprep.subr.bf16.mxu1 %v2016_v56 }
 0x2d2   :  { %1437 = vmatpush1.bf16.msra.mxu1 %v2014_v57 }
 0x2d3   :  { %1438 = vmatprep.subr.bf16.mxu1 %v2019_v48 }
 0x2d6   :  { %1439 = vmatpush1.bf16.msra.mxu1 %v2017_v58 }
 0x2d7   :  { %1440 = vmatprep.subr.bf16.mxu1 %v2022_v59 }
 0x2da   :  { %1441 = vmatpush1.bf16.msra.mxu1 %v2020_v60 }
 0x2db   :  { %1442 = vmatprep.subr.bf16.mxu1 %v2025_v61 }
 0x2de   :  { %1443 = vmatpush1.bf16.msra.mxu1 %v2023_v62 }
 0x2df   :  { %1444 = vmatprep.subr.bf16.mxu1 %v2028_v4 }
 0x2e2   :  { %1445 = vmatpush1.bf16.msra.mxu1 %v2026_v2 }
 0x2e3   :  { %1446 = vmatprep.subr.bf16.mxu1 %v2031_v7 }
 0x2e6   :  { %1447 = vmatpush1.bf16.msra.mxu1 %v2029_v8 }
 0x2e7   :  { %1448 = vmatprep.subr.bf16.mxu1 %v2034_v12 }
 0x2ea   :  { %1449 = vmatpush1.bf16.msra.mxu1 %v2032_v13 }
 0x2ed   :  { %1451 = vmatmul.mubr.bf16.vlgmr.msra.gmra.mrb[0].mxu1 %v979_v15 }
 0x3c0   :  { %v1452_v23 = vpop.f32.mrb[0].mxu1 }
 0x3c1   :  { %v1856_v25 = vadd.f32 %v1452_v23, %v1050_v10  ;;  %v1454_v27 = vpop.f32.mrb[1].mxu1 }
 0x3c2   :  { %v1857_v41 = vadd.f32 %v1454_v27, %v1054_v22  ;;  %v1456_v6 = vpop.f32.mrb[2].mxu1 }
 0x3c3   :  { %v1459_v28 = vmax.f32 %v1856_v25, 0.0  ;;  %v1457_v29 = vpop.f32.mrb[3].mxu1 }
 0x3c4   :  { %v1460_v30 = vmax.f32 %v1857_v41, 0.0 }
 0x3c5   :  { %v1461_v32 = vpack.c.bf16 %v1459_v28, %v1459_v28 }
 0x3c6   :  { %v1462_v31 = vpack.c.bf16 %v1460_v30, %v1460_v30 }
 0x3c8   :  { %1630 = vmatprep.mubr.bf16.mxu0 %v1462_v31 }
 0x3c9   :  { %1631 = vmatmul.mubr.bf16.vlgmr.msra.gmra.mrb[24].mxu0 %v1461_v32 }
 0x49c   :  { %v1818_v24 = vpop.f32.mrb[24].mxu0 }
 0x49d   :  { %v1819_v33 = vpop.f32.mrb[25].mxu0 }
 0x49e   :  { %v1820_v9 = vadd.f32 %v1819_v33, %v1818_v24  ;;  %v1821_v20 = vpop.f32.mrb[26].mxu0 }
 0x49f   :  { %v1822_v34 = vpop.f32.mrb[27].mxu0 }
 0x4a0   :  { %v1633_v35 = vadd.f32 %v1820_v9, %v1769_v18 }
 0x4a2   :  { %1638 = vst [vmem:[#allocation8] sm:$0xff] %v1633_v35 }
 0x4a3   :  { %2128 = shalt.err (!%p2125_p0)
}
 0x4a4   :  { %s2129_s9 = scalar_lea.hbm %s2556_s10, 128 }
 0x4a5   :  { %p2130_p1 = scmp.ne.s32.totalorder %s2556_s10, %s2129_s9  ;;  %p2133_p2 = scmp.lt.u32.totalorder %s2129_s9, %s2556_s10 }
 0x4a7   :  { %p2135_p3 = pnand %p2133_p2, %p2130_p1 }
 0x4a9   :  { %2138 = shalt.err (!%p2135_p3)
}
 0x4aa   :  { %1648 = dma.vmem_to_hbm [thread:$0]  %s1646_s27, 128, %s2556_s10, [#allocation4]  }
 0x4ab   :  { %2143 = dma.done.wait [#allocation4], 128  }
 0x4ac   :  { %2144 = vsyncadd [#allocation4], 4294967168 }
 0x4ad   :  { %1652 = vsyncpa [#allocation3], 1 }
 0x4ae   :  { %1653 = vsyncpa [#allocation6], 1 }
 0x4af   :  { %1654 = vsyncpa [#allocation4], 1 }

</bundles_post_ra>
